<compile_context>
chip_gen: v6e
topology: v6e:2x2x1
jax: 0.10.0
libtpu: 0.0.40
codegen_flags: <defaults>
</compile_context>

<pallas_src>
import math

import jax
import jax.numpy as jnp
from jax import lax
from jax.experimental import pallas as pl
from jax.experimental.pallas import tpu as pltpu

LEAK = 0.2
BN_EPS = 1e-5


# ----------------------------------------------------------------------------
# Fused kernel: (x1 + x2) -> conv1d(k=3, SAME) -> BatchNorm(batch stats) -> LeakyReLU
# One grid step handles one TN-wide block of output channels.
# ----------------------------------------------------------------------------
def _unet_up_kernel(x1_ref, x2_ref, w_ref, g_ref, bt_ref, o_ref, xcol_ref):
    # x1_ref, x2_ref : (B, T+2, C)  bf16  zero-padded by 1 timestep on each side
    # w_ref          : (K*C, TN)    bf16  conv taps flattened into the contraction dim
    # g_ref, bt_ref  : (1, TN)      f32   BN gamma / beta for this channel block
    # o_ref          : (B, T, TN)   f32
    # xcol_ref       : (B*T, K*C)   bf16  VMEM im2col scratch
    B, T, TN = o_ref.shape
    C = x1_ref.shape[2]
    K = xcol_ref.shape[1] // C
    inv_m = 1.0 / float(B * T)

    # Build the im2col LHS: skip-add done ONCE per batch (hoisted out of the
    # tap loop, in f32 for accuracy), then K shifted copies into the scratch.
    # Rebuilt per N-block grid step (~48 KiB of VMEM copies — negligible), which
    # keeps the N axis an exact, reduction-free "parallel" split.
    for b in range(B):
        xsum = x1_ref[b].astype(jnp.float32) + x2_ref[b].astype(jnp.float32)  # (T+2, C)
        for tap in range(K):
            xcol_ref[b * T:(b + 1) * T, tap * C:(tap + 1) * C] = (
                xsum[tap:tap + T, :].astype(jnp.bfloat16)
            )

    # ONE MXU call: (B*T, K*C) x (K*C, TN), bf16 operands, f32 accumulation.
    # Conv bias intentionally omitted: batch-statistic BN cancels it exactly.
    acc = jnp.dot(xcol_ref[...], w_ref[...], preferred_element_type=jnp.float32)

    # Single-pass BatchNorm statistics over ALL B*T rows, per channel (f32).
    s1 = acc.sum(axis=0, keepdims=True)
    s2 = (acc * acc).sum(axis=0, keepdims=True)
    mean = s1 * inv_m                                             # (1, TN)
    var = jnp.maximum(s2 * inv_m - mean * mean, 0.0)              # biased variance
    inv_std = lax.rsqrt(var + BN_EPS)

    # Fold BN affine into one (1, TN) scale/shift.
    scale = g_ref[...] * inv_std
    shift = bt_ref[...] - mean * scale

    y = acc * scale + shift
    y = jnp.where(y >= 0.0, y, LEAK * y)                          # LeakyReLU(0.2)
    o_ref[...] = y.reshape(B, T, TN)


# ----------------------------------------------------------------------------
# Wrapper: layout plumbing (repeat_interleave + crop + TF-"SAME" pad) + pallas_call
# ----------------------------------------------------------------------------
def unet_up(x1, x2, params, *, tn=128):
    """x1: (B, T1, C_in), x2: (B, T2, C_in) channels-last; returns (B, T2, C_out)."""
    B, _, C = x1.shape
    T = x2.shape[1]
    KC, N = params["w"].shape

    # Output-channel tile: 128 is MXU-native on v5e and gives v7x's two
    # TensorCores one slab each; on v6e (single TC, 256-wide MXU) tn=256
    # preserves full MXU width per issue.
    if N % tn != 0:
        tn = N
    grid_n = N // tn

    # repeat_interleave along time + crop to x2's length (== torch dim=2 in NCT).
    x1r = jnp.repeat(x1, 2, axis=1)[:, :T]
    # TF "SAME" padding for k=3, s=1 is one zero timestep on each side.
    # bf16 activations: halves activation DMA; MXU operands are bf16 anyway.
    x1p = jnp.pad(x1r.astype(jnp.bfloat16), ((0, 0), (1, 1), (0, 0)))
    x2p = jnp.pad(x2.astype(jnp.bfloat16), ((0, 0), (1, 1), (0, 0)))

    return pl.pallas_call(
        _unet_up_kernel,
        out_shape=jax.ShapeDtypeStruct((B, T, N), jnp.float32),
        grid=(grid_n,),
        in_specs=[
            pl.BlockSpec((B, T + 2, C), lambda j: (0, 0, 0)),   # resident across N steps
            pl.BlockSpec((B, T + 2, C), lambda j: (0, 0, 0)),
            pl.BlockSpec((KC, tn), lambda j: (0, j)),           # weight slab pipelined per step
            pl.BlockSpec((1, tn), lambda j: (0, j)),
            pl.BlockSpec((1, tn), lambda j: (0, j)),
        ],
        out_specs=pl.BlockSpec((B, T, tn), lambda j: (0, 0, j)),
        scratch_shapes=[pltpu.VMEM((B * T, KC), jnp.bfloat16)],  # im2col LHS
        compiler_params=pltpu.CompilerParams(
            # Per-channel BN statistics => the N-split is exact (no cross-step
            # reduction), so it is safe to shard across v7x's two TensorCores.
            dimension_semantics=("parallel",),
        ),
    )(
        x1p,
        x2p,
        params["w"],
        params["gamma"].reshape(1, N),
        params["beta"].reshape(1, N),
    )


# ----------------------------------------------------------------------------
# Deterministic synthetic parameters (shapes follow ConvNormRelu(in_ch, out_ch, k=3))
# ----------------------------------------------------------------------------
def init_unet_up(key, in_ch, out_ch, k=3):
    k1, k2, k3 = jax.random.split(key, 3)
    fan_in = k * in_ch
    w = jax.random.normal(k1, (k, in_ch, out_ch), jnp.float32) / math.sqrt(fan_in)
    return {
        # Taps flattened into the contraction dim: (k*in_ch, out_ch), bf16 storage
        # for the MXU path; accumulation stays f32 inside the kernel.
        "w": w.reshape(k * in_ch, out_ch).astype(jnp.bfloat16),
        "gamma": 1.0 + 0.1 * jax.random.normal(k2, (out_ch,), jnp.float32),
        "beta": 0.1 * jax.random.normal(k3, (out_ch,), jnp.float32),
        # Conv bias omitted: exactly cancelled by batch-statistic BatchNorm.
        # NOTE: only valid for training-mode (batch-stat) BN; eval-mode BN would
        # need the bias re-added before normalization.
    }


if __name__ == "__main__":
    key = jax.random.PRNGKey(0)
    pkey, xk1, xk2 = jax.random.split(key, 3)

    B, T1, T2, C_IN, C_OUT = 2, 8, 16, 256, 256
    params = init_unet_up(pkey, C_IN, C_OUT)
    x1 = jax.random.normal(xk1, (B, T1, C_IN), jnp.float32)   # low-res stream
    x2 = jax.random.normal(xk2, (B, T2, C_IN), jnp.float32)   # skip connection

    fwd = jax.jit(unet_up)
    out = jax.block_until_ready(fwd(x1, x2, params))

    assert out.shape == (B, T2, C_OUT), out.shape
    assert bool(jnp.all(jnp.isfinite(out)))
    print("KERNEL_OK")
</pallas_src>

<mosaic_0001>
module attributes {stable_mosaic.version = 11 : i64} {
  func.func @_unet_up_kernel(%arg0: i32, %arg1: memref<2x18x256xbf16, #tpu.memory_space<vmem>>, %arg2: memref<2x18x256xbf16, #tpu.memory_space<vmem>>, %arg3: memref<768x128xbf16, #tpu.memory_space<vmem>>, %arg4: memref<1x128xf32, #tpu.memory_space<vmem>>, %arg5: memref<1x128xf32, #tpu.memory_space<vmem>>, %arg6: memref<2x16x128xf32, #tpu.memory_space<vmem>>, %arg7: memref<32x768xbf16, #tpu.memory_space<vmem>>) attributes {dimension_semantics = [#tpu.dimension_semantics<parallel>], iteration_bounds = array<i64: 2>, scalar_prefetch = 0 : i64, scratch_operands = 1 : i64, tpu.core_type = #tpu.core_type<tc>, window_params = [{pipeline_mode = #tpu.pipeline_mode<synchronous>, transform_indices = @transform_0, window_bounds = array<i64: 2, 18, 256>}, {pipeline_mode = #tpu.pipeline_mode<synchronous>, transform_indices = @transform_1, window_bounds = array<i64: 2, 18, 256>}, {transform_indices = @transform_2, window_bounds = array<i64: 768, 128>}, {transform_indices = @transform_3, window_bounds = array<i64: 1, 128>}, {transform_indices = @transform_4, window_bounds = array<i64: 1, 128>}, {transform_indices = @transform_5, window_bounds = array<i64: 2, 16, 128>}]} {
    %c0 = arith.constant 0 : index
    %c0_0 = arith.constant 0 : index
    %c0_1 = arith.constant 0 : index
    %0 = vector.load %arg1[%c0, %c0_0, %c0_1] : memref<2x18x256xbf16, #tpu.memory_space<vmem>>, vector<1x18x256xbf16>
    %1 = vector.shape_cast %0 : vector<1x18x256xbf16> to vector<18x256xbf16>
    %2 = arith.extf %1 : vector<18x256xbf16> to vector<18x256xf32>
    %c0_2 = arith.constant 0 : index
    %c0_3 = arith.constant 0 : index
    %c0_4 = arith.constant 0 : index
    %3 = vector.load %arg2[%c0_2, %c0_3, %c0_4] : memref<2x18x256xbf16, #tpu.memory_space<vmem>>, vector<1x18x256xbf16>
    %4 = vector.shape_cast %3 : vector<1x18x256xbf16> to vector<18x256xbf16>
    %5 = arith.extf %4 : vector<18x256xbf16> to vector<18x256xf32>
    %6 = arith.addf %2, %5 : vector<18x256xf32>
    %7 = vector.extract_strided_slice %6 {offsets = [0, 0], sizes = [16, 256], strides = [1, 1]} : vector<18x256xf32> to vector<16x256xf32>
    %8 = arith.truncf %7 : vector<16x256xf32> to vector<16x256xbf16>
    %c0_5 = arith.constant 0 : index
    %c0_6 = arith.constant 0 : index
    %9 = vector.load %arg7[%c0_5, %c0_6] : memref<32x768xbf16, #tpu.memory_space<vmem>>, vector<16x256xbf16>
    tpu.vector_store %arg7[%c0_5, %c0_6], %8 {strides = array<i32>} : memref<32x768xbf16, #tpu.memory_space<vmem>>, vector<16x256xbf16>,
    %10 = vector.extract_strided_slice %6 {offsets = [1, 0], sizes = [16, 256], strides = [1, 1]} : vector<18x256xf32> to vector<16x256xf32>
    %11 = arith.truncf %10 : vector<16x256xf32> to vector<16x256xbf16>
    %c0_7 = arith.constant 0 : index
    %c256 = arith.constant 256 : index
    %12 = vector.load %arg7[%c0_7, %c256] : memref<32x768xbf16, #tpu.memory_space<vmem>>, vector<16x256xbf16>
    tpu.vector_store %arg7[%c0_7, %c256], %11 {strides = array<i32>} : memref<32x768xbf16, #tpu.memory_space<vmem>>, vector<16x256xbf16>,
    %13 = vector.extract_strided_slice %6 {offsets = [2, 0], sizes = [16, 256], strides = [1, 1]} : vector<18x256xf32> to vector<16x256xf32>
    %14 = arith.truncf %13 : vector<16x256xf32> to vector<16x256xbf16>
    %c0_8 = arith.constant 0 : index
    %c512 = arith.constant 512 : index
    %15 = vector.load %arg7[%c0_8, %c512] : memref<32x768xbf16, #tpu.memory_space<vmem>>, vector<16x256xbf16>
    tpu.vector_store %arg7[%c0_8, %c512], %14 {strides = array<i32>} : memref<32x768xbf16, #tpu.memory_space<vmem>>, vector<16x256xbf16>,
    %c1 = arith.constant 1 : index
    %c0_9 = arith.constant 0 : index
    %c0_10 = arith.constant 0 : index
    %16 = vector.load %arg1[%c1, %c0_9, %c0_10] : memref<2x18x256xbf16, #tpu.memory_space<vmem>>, vector<1x18x256xbf16>
    %17 = vector.shape_cast %16 : vector<1x18x256xbf16> to vector<18x256xbf16>
    %18 = arith.extf %17 : vector<18x256xbf16> to vector<18x256xf32>
    %c1_11 = arith.constant 1 : index
    %c0_12 = arith.constant 0 : index
    %c0_13 = arith.constant 0 : index
    %19 = vector.load %arg2[%c1_11, %c0_12, %c0_13] : memref<2x18x256xbf16, #tpu.memory_space<vmem>>, vector<1x18x256xbf16>
    %20 = vector.shape_cast %19 : vector<1x18x256xbf16> to vector<18x256xbf16>
    %21 = arith.extf %20 : vector<18x256xbf16> to vector<18x256xf32>
    %22 = arith.addf %18, %21 : vector<18x256xf32>
    %23 = vector.extract_strided_slice %22 {offsets = [0, 0], sizes = [16, 256], strides = [1, 1]} : vector<18x256xf32> to vector<16x256xf32>
    %24 = arith.truncf %23 : vector<16x256xf32> to vector<16x256xbf16>
    %c16 = arith.constant 16 : index
    %c0_14 = arith.constant 0 : index
    %25 = vector.load %arg7[%c16, %c0_14] : memref<32x768xbf16, #tpu.memory_space<vmem>>, vector<16x256xbf16>
    tpu.vector_store %arg7[%c16, %c0_14], %24 {strides = array<i32>} : memref<32x768xbf16, #tpu.memory_space<vmem>>, vector<16x256xbf16>,
    %26 = vector.extract_strided_slice %22 {offsets = [1, 0], sizes = [16, 256], strides = [1, 1]} : vector<18x256xf32> to vector<16x256xf32>
    %27 = arith.truncf %26 : vector<16x256xf32> to vector<16x256xbf16>
    %c16_15 = arith.constant 16 : index
    %c256_16 = arith.constant 256 : index
    %28 = vector.load %arg7[%c16_15, %c256_16] : memref<32x768xbf16, #tpu.memory_space<vmem>>, vector<16x256xbf16>
    tpu.vector_store %arg7[%c16_15, %c256_16], %27 {strides = array<i32>} : memref<32x768xbf16, #tpu.memory_space<vmem>>, vector<16x256xbf16>,
    %29 = vector.extract_strided_slice %22 {offsets = [2, 0], sizes = [16, 256], strides = [1, 1]} : vector<18x256xf32> to vector<16x256xf32>
    %30 = arith.truncf %29 : vector<16x256xf32> to vector<16x256xbf16>
    %c16_17 = arith.constant 16 : index
    %c512_18 = arith.constant 512 : index
    %31 = vector.load %arg7[%c16_17, %c512_18] : memref<32x768xbf16, #tpu.memory_space<vmem>>, vector<16x256xbf16>
    tpu.vector_store %arg7[%c16_17, %c512_18], %30 {strides = array<i32>} : memref<32x768xbf16, #tpu.memory_space<vmem>>, vector<16x256xbf16>,
    %c0_19 = arith.constant 0 : index
    %c0_20 = arith.constant 0 : index
    %32 = vector.load %arg7[%c0_19, %c0_20] : memref<32x768xbf16, #tpu.memory_space<vmem>>, vector<32x768xbf16>
    %c0_21 = arith.constant 0 : index
    %c0_22 = arith.constant 0 : index
    %33 = vector.load %arg3[%c0_21, %c0_22] : memref<768x128xbf16, #tpu.memory_space<vmem>>, vector<768x128xbf16>
    %cst = arith.constant dense<0.000000e+00> : vector<32x128xf32>
    %34 = tpu.matmul %32, %33, %cst {dimension_numbers = #tpu.dot_dimension_numbers<[1], [0], [0], [1], [0, 0, 1, 1], [], []>} : vector<32x768xbf16>, vector<768x128xbf16>, vector<32x128xf32> -> vector<32x128xf32>
    %cst_23 = arith.constant dense<0.000000e+00> : vector<128xf32>
    %35 = vector.multi_reduction <add>, %34, %cst_23 [0] : vector<32x128xf32> to vector<128xf32>
    %36 = vector.shape_cast %35 : vector<128xf32> to vector<1x128xf32>
    %37 = arith.mulf %34, %34 : vector<32x128xf32>
    %cst_24 = arith.constant dense<0.000000e+00> : vector<128xf32>
    %38 = vector.multi_reduction <add>, %37, %cst_24 [0] : vector<32x128xf32> to vector<128xf32>
    %39 = vector.shape_cast %38 : vector<128xf32> to vector<1x128xf32>
    %cst_25 = arith.constant 3.125000e-02 : f32
    %40 = vector.broadcast %cst_25 : f32 to vector<1x128xf32>
    %41 = arith.mulf %36, %40 : vector<1x128xf32>
    %cst_26 = arith.constant 3.125000e-02 : f32
    %42 = vector.broadcast %cst_26 : f32 to vector<1x128xf32>
    %43 = arith.mulf %39, %42 : vector<1x128xf32>
    %44 = arith.mulf %41, %41 : vector<1x128xf32>
    %45 = arith.subf %43, %44 : vector<1x128xf32>
    %cst_27 = arith.constant 0.000000e+00 : f32
    %46 = vector.broadcast %cst_27 : f32 to vector<1x128xf32>
    %47 = arith.maximumf %45, %46 : vector<1x128xf32>
    %cst_28 = arith.constant 9.99999974E-6 : f32
    %48 = vector.broadcast %cst_28 : f32 to vector<1x128xf32>
    %49 = arith.addf %47, %48 : vector<1x128xf32>
    %50 = math.rsqrt %49 : vector<1x128xf32>
    %c0_29 = arith.constant 0 : index
    %c0_30 = arith.constant 0 : index
    %51 = vector.load %arg4[%c0_29, %c0_30] : memref<1x128xf32, #tpu.memory_space<vmem>>, vector<1x128xf32>
    %52 = arith.mulf %51, %50 : vector<1x128xf32>
    %c0_31 = arith.constant 0 : index
    %c0_32 = arith.constant 0 : index
    %53 = vector.load %arg5[%c0_31, %c0_32] : memref<1x128xf32, #tpu.memory_space<vmem>>, vector<1x128xf32>
    %54 = arith.mulf %41, %52 : vector<1x128xf32>
    %55 = arith.subf %53, %54 : vector<1x128xf32>
    %56 = vector.broadcast %52 : vector<1x128xf32> to vector<32x128xf32>
    %57 = arith.mulf %34, %56 : vector<32x128xf32>
    %58 = vector.broadcast %55 : vector<1x128xf32> to vector<32x128xf32>
    %59 = arith.addf %57, %58 : vector<32x128xf32>
    %cst_33 = arith.constant 0.000000e+00 : f32
    %60 = vector.broadcast %cst_33 : f32 to vector<32x128xf32>
    %61 = arith.cmpf oge, %59, %60 : vector<32x128xf32>
    %cst_34 = arith.constant 2.000000e-01 : f32
    %62 = vector.broadcast %cst_34 : f32 to vector<32x128xf32>
    %63 = arith.mulf %62, %59 : vector<32x128xf32>
    %64 = arith.select %61, %59, %63 : vector<32x128xi1>, vector<32x128xf32>
    %65 = vector.shape_cast %64 : vector<32x128xf32> to vector<2x16x128xf32>
    %c0_35 = arith.constant 0 : index
    %c0_36 = arith.constant 0 : index
    %c0_37 = arith.constant 0 : index
    %66 = vector.load %arg6[%c0_35, %c0_36, %c0_37] : memref<2x16x128xf32, #tpu.memory_space<vmem>>, vector<2x16x128xf32>
    tpu.vector_store %arg6[%c0_35, %c0_36, %c0_37], %65 {strides = array<i32>} : memref<2x16x128xf32, #tpu.memory_space<vmem>>, vector<2x16x128xf32>,
    return
  }
  func.func @transform_0(%arg0: i32) -> (i32, i32, i32) {
    %c0_i32 = arith.constant 0 : i32
    %c0_i32_0 = arith.constant 0 : i32
    %c0_i32_1 = arith.constant 0 : i32
    %c0_i32_2 = arith.constant 0 : i32
    return %c0_i32, %c0_i32_0, %c0_i32_1 : i32, i32, i32
  }
  func.func @transform_1(%arg0: i32) -> (i32, i32, i32) {
    %c0_i32 = arith.constant 0 : i32
    %c0_i32_0 = arith.constant 0 : i32
    %c0_i32_1 = arith.constant 0 : i32
    %c0_i32_2 = arith.constant 0 : i32
    return %c0_i32, %c0_i32_0, %c0_i32_1 : i32, i32, i32
  }
  func.func @transform_2(%arg0: i32) -> (i32, i32) {
    %c0_i32 = arith.constant 0 : i32
    %c0_i32_0 = arith.constant 0 : i32
    return %c0_i32, %arg0 : i32, i32
  }
  func.func @transform_3(%arg0: i32) -> (i32, i32) {
    %c0_i32 = arith.constant 0 : i32
    %c0_i32_0 = arith.constant 0 : i32
    return %c0_i32, %arg0 : i32, i32
  }
  func.func @transform_4(%arg0: i32) -> (i32, i32) {
    %c0_i32 = arith.constant 0 : i32
    %c0_i32_0 = arith.constant 0 : i32
    return %c0_i32, %arg0 : i32, i32
  }
  func.func @transform_5(%arg0: i32) -> (i32, i32, i32) {
    %c0_i32 = arith.constant 0 : i32
    %c0_i32_0 = arith.constant 0 : i32
    %c0_i32_1 = arith.constant 0 : i32
    return %c0_i32, %c0_i32_0, %arg0 : i32, i32, i32
  }
}

</mosaic_0001>

<bundles_post_ra>
// kernel: unet_up.1
= control target key start
LH: loop header
LB: loop body
LE: loop exit
PB: predicated region body
PF: predicated region fallthrough
CT: control target
= control target key end

     0   :  { %10 = vsyncpa [#allocation4], 0  ;;  %s1981_s0 = inlined_call_operand.vmem [shape: bf16[2,18,256], index: 0, kind: input, shape index: {}]   ;;  %s1982_s1 = inlined_call_operand.vmem [shape: bf16[2,18,256], index: 1, kind: input, shape index: {}]   ;;  %s1983_s2 = inlined_call_operand.hbm [shape: bf16[768,256], index: 2, kind: input, shape index: {}]   ;;  %s1984_s3 = inlined_call_operand.vmem [shape: f32[1,256], index: 3, kind: input, shape index: {}]   ;;  %s1985_s4 = inlined_call_operand.vmem [shape: f32[1,256], index: 4, kind: input, shape index: {}]   ;;  %s1986_s5 = inlined_call_operand.hbm [shape: f32[2,16,256], index: 5, kind: output, shape index: {}]  }
   0x1   :  { %12 = vsyncpa [#allocation4 + $0x1], 0 }
   0x2   :  { %13 = vsyncpa [#allocation5], 0 }
   0x3   :  { %15 = vsyncpa [#allocation5 + $0x1], 0  ;;  %s1654_s18 = smov 0   ;;  %s1656_s19 = smov 0  }
   0x4   :  { %s1658_s20 = smov 0   ;;  %s1660_s21 = smov 0  }
   0x5 LB: > { %s1675_s22 = sadd.s32 4294967295, %s1614_s21   ;;  %s1224_s23 = sadd.s32 4294967294, %s1614_s21   ;;  %s1614_s21 = sphi %s1660_s21, %s2005_s21   ;;  %s1610_s20 = sphi %s1658_s20, %s2004_s20   ;;  %s1606_s19 = sphi %s1656_s19, %s2003_s19   ;;  %s1602_s18 = sphi %s1654_s18, %s2002_s18  }
   0x6   : > { %s1679_s24 = sadd.s32 1, %s1614_s21   ;;  %s70_s25 = sadd.s32 1, %s1610_s20 }
   0x7   : > { %s67_s26 = ssub.s32 %s1614_s21, %s1679_s24  ;;  %p77_p0 = scmp.ne.s32.totalorder %s1610_s20, %s1606_s19 }
   0x8   : > { %p68_p1 = scmp.eq.s32.totalorder %s67_s26, 0  ;;  %p78_p2 = scmp.eq.s32.totalorder %s1614_s21, 0 }
   0x9   : > { %p83_p3 = scmp.ne.s32.totalorder %s1606_s19, %s1602_s18  ;;  %p84_p4 = scmp.eq.s32.totalorder %s1675_s22, 0 }
   0xa   : > { %s1691_s27 = scalar_select %p68_p1, %s1610_s20, %s70_s25  }
   0xb   : > { %p79_p5 = por %p78_p2, %p77_p0  ;;  %p1693_p6 = por %p84_p4, %p83_p3 }
   0xc   : > { %p159_p7 = scmp.eq.s32.totalorder %s1675_s22, 1  ;;  %p165_p8 = scmp.eq.s32.totalorder %s1224_s23, 1 }
   0xd   : > { %s1989_s28 = scalar_select %p1693_p6, 1, 0 }
   0xe   : > { %p1432_p10 = scmp.lt.s32.totalorder %s1614_s21, 2  ;;  %p1700_p11 = por %p159_p7, %p77_p0 }
   0xf   : > { %p1704_p12 = por %p165_p8, %p83_p3  ;;  %s191_s6 = sand.u32 1, %s1610_s20  }
  0x10   : > { %s1990_s29 = scalar_select %p1700_p11, 1, 0 }
  0x11   : > { %s1991_s30 = scalar_select %p1704_p12, 1, 0 }
  0x12   : > { %s1227_s7 = sshll.u32 %s1614_s21, 6  ;;  %s1418_s8 = smul.u32 384, %s191_s6 }
  0x13   : > { %s1713_s11 = scalar_lea.hbm %s1983_s2, %s1227_s7  ;;  %p1715_p13 = pnand %p1432_p10, %p79_p5 }
  0x14   : > { %s195_s13 = scalar_lea.vmem [#allocation3], %s1418_s8  ;;  %s1722_s15 = scalar_lea.sflag [#allocation4], %s191_s6 }
  0x15   : > { %s201_s14 = sshll.u32 %s195_s13, 4  ;;  %s1522_s16 = scalar_lea.hbm %s1713_s11, 6144  ;;  %s1719_s14 = int_to_ptr.vmem [resolvable:$true] %s201_s14 }
  0x16   : > { %p1523_p1 = scmp.ne.s32.totalorder %s1713_s11, %s1522_s16  ;;  %p1524_p2 = pneg %p1715_p13 }
  0x17   : > { %s1527_s25 = scalar_lea.hbm %s1983_s2, 12288  ;;  %p1528_p5 = scmp.lt.s32.totalorder %s1713_s11, %s1983_s2 }
  0x18   : > { %p1525_p3 = pnand %p1524_p2, %p1523_p1  ;;  %p1529_p7 = scmp.lt.s32.totalorder %s1527_s25, %s1522_s16 }
  0x1a   : > { %p1526_p4 = pneg %p1525_p3  ;;  %p1530_p8 = por %p1529_p7, %p1528_p5 }
  0x1c   : > { %p1531_p10 = pnand %p1530_p8, %p1526_p4 }
  0x1e   : > { %1534 = shalt.err (!%p1531_p10)
}
  0x1f   : > { %s1535_s6 = scalar_lea.vmem %s1719_s14, 6144  ;;  %s1616_s8 = smov [#allocation3]  }
  0x20   : > { %p1536_p9 = scmp.ne.s32.totalorder %s1719_s14, %s1535_s6  ;;  %s1540_s9 = sshll.u32 %s1616_s8, 4  ;;  %s1541_s9 = int_to_ptr.vmem [resolvable:$false] %s1540_s9 }
  0x21   : > { %s1542_s10 = scalar_lea.vmem %s1541_s9, 12288  ;;  %p1543_p3 = scmp.lt.s32.totalorder %s1719_s14, %s1541_s9 }
  0x22   : > { %p1538_p0 = pnand %p1536_p9, %p1524_p2  ;;  %p1544_p12 = scmp.lt.s32.totalorder %s1542_s10, %s1535_s6 }
  0x24   : > { %p1539_p1 = pneg %p1538_p0  ;;  %p1545_p11 = por %p1544_p12, %p1543_p3 }
  0x26   : > { %p1546_p6 = pnand %p1545_p11, %p1539_p1 }
  0x28   : > { %1549 = shalt.err (!%p1546_p6)
}
  0x29   : > { %s1617_s13 = smov 128   ;;  %s1618_s16 = smov 64  }
  0x2a   : > { %s1619_s17 = smov 4   ;;  %p221_p9 = scmp.lt.s32.totalorder %s1614_s21, 3 }
  0x2b   : > { %1427 = dma.hbm_to_vmem [thread:$0]  (!%p1715_p13), %s1713_s11, 6144, %s1719_s14, %s1722_s15, %s1617_s13, %s1618_s16, %s1619_s17  }
  0x2c   : > { %p1993_p0 = scmp.ge.s32.totalorder %s1614_s21, 1 }
  0x2e   : > { %p222_p2 = pnand %p1993_p0, %p221_p9 }
  0x2f   : > { %s1747_s23 = sand.u32 (!%p222_p2), 1, %s1606_s19   ;;  %p1994_p6 = scmp.ne.s32.totalorder (!%p222_p2), %s1989_s28, 0 }
  0x30   : > { %225 = sbr.rel (%p222_p2) target bundleno = 395 (0x18b), region = 40  ;;  %s228_s26 = scalar_lea.sflag (!%p222_p2), [#allocation4], %s1747_s23 }
  0x31   : > { %s1419_s25 = smul.u32 (!%p222_p2), 384, %s1747_s23 }
  0x33   : > { %s1751_s7 = scalar_lea.vmem (!%p222_p2), [#allocation3], %s1419_s25 }
  0x35   : > { %1593 = dma.done.wait (%p1994_p6), %s228_s26, 6144  }
  0x36   : > { %1595 = vsyncadd (%p1994_p6), %s228_s26, 4294961152  ;;  %v1472_v0 = vld [vmem:[%s1751_s7 + $0x78] sm:$0xff]   ;;  %v1476_v4 = vld [vmem:[%s1751_s7 + $0x70] sm:$0xff]   ;;  %vm316_vm0 = vsmask.f32 3328  ;;  %vm347_vm2 = vcmask 1042432  }
  0x37   : > { %v1473_v1 = vld [vmem:[%s1751_s7 + $0xf8] sm:$0xff]   ;;  %1318 = vmatprep.subr.bf16.mxu0 %v1472_v0  ;;  %v1477_v5 = vld [vmem:[%s1751_s7 + $0xf0] sm:$0xff]   ;;  %v1480_v8 = vld [vmem:[%s1751_s7 + $0x68] sm:$0xff]   ;;  %vm317_vm1 = vsmask.f32 7440  ;;  %vm348_vm3 = vcmask 1046532  }
  0x38   : > { %v1474_v2 = vld [vmem:[%s1751_s7 + $0x38] sm:$0xff]   ;;  %1346 = vmatprep.subr.bf16.mxu1 %v1473_v1  ;;  %v1478_v6 = vld [vmem:[%s1751_s7 + $0x30] sm:$0xff]   ;;  %v1481_v9 = vld [vmem:[%s1751_s7 + $0xe8] sm:$0xff]   ;;  %p264_p11 = scmp.lt.s32.totalorder %s1675_s22, 1  ;;  %s1229_s12 = sshll.u32 %s1747_s23, 5 }
  0x39   : > { %v1475_v3 = vld [vmem:[%s1751_s7 + $0xb8] sm:$0xff]   ;;  %1319 = vmatpush3.bf16.msra.mxu0 %v1474_v2  ;;  %v1479_v7 = vld [vmem:[%s1751_s7 + $0xb0] sm:$0xff]   ;;  %v1482_v10 = vld [vmem:[%s1751_s7 + $0x28] sm:$0xff]   ;;  %s263_s14 = scalar_lea.vmem [#allocation6], %s1229_s12  ;;  %s1305_s6 = sshll.u32 %s1675_s22, 7 }
  0x3a   : > { %1347 = vmatpush3.bf16.msra.mxu1 %v1475_v3  ;;  %1320 = vmatprep.subr.bf16.mxu0 %v1476_v4  ;;  %v1483_v11 = vld [vmem:[%s1751_s7 + $0xa8] sm:$0xff]   ;;  %v1484_v12 = vld [vmem:[%s1751_s7 + $0x60] sm:$0xff]   ;;  %v1488_v16 = vld [vmem:[%s1751_s7 + $0x58] sm:$0xff]   ;;  %s1133_s15 = sshll.u32 %s263_s14, 4  ;;  %s1938_s10 = scalar_lea.hbm %s1986_s5, %s1305_s6  ;;  %s1933_s15 = int_to_ptr.vmem [resolvable:$true] %s1133_s15 }
  0x3b   : > { %1348 = vmatprep.subr.bf16.mxu1 %v1477_v5  ;;  %v1485_v13 = vld [vmem:[%s1751_s7 + $0xe0] sm:$0xff]   ;;  %v1489_v17 = vld [vmem:[%s1751_s7 + $0xd8] sm:$0xff]   ;;  %v1492_v20 = vld [vmem:[%s1751_s7 + $0x50] sm:$0xff]   ;;  %s1550_s13 = scalar_lea.vmem %s1933_s15, 512  ;;  %p1999_p13 = scmp.ne.s32.totalorder %s1990_s29, 0 }
  0x3c   : > { %v1486_v14 = vld [vmem:[%s1751_s7 + $0x20] sm:$0xff]   ;;  %v1490_v18 = vld [vmem:[%s1751_s7 + $0x18] sm:$0xff]   ;;  %v1493_v21 = vld [vmem:[%s1751_s7 + $0xd0] sm:$0xff]   ;;  %p1551_p12 = scmp.ne.s32.totalorder %s1933_s15, %s1550_s13 }
  0x3d   : > { %1321 = vmatpush3.bf16.msra.mxu0 %v1478_v6  ;;  %v1487_v15 = vld [vmem:[%s1751_s7 + $0xa0] sm:$0xff]   ;;  %v1491_v19 = vld [vmem:[%s1751_s7 + $0x98] sm:$0xff]   ;;  %v1494_v22 = vld [vmem:[%s1751_s7 + $0x10] sm:$0xff]  }
  0x3e   : > { %1349 = vmatpush3.bf16.msra.mxu1 %v1479_v7  ;;  %1322 = vmatprep.subr.bf16.mxu0 %v1480_v8  ;;  %v1495_v23 = vld [vmem:[%s1751_s7 + $0x90] sm:$0xff]   ;;  %v1496_v24 = vld [vmem:[%s1751_s7 + $0x48] sm:$0xff]   ;;  %v1500_v28 = vld [vmem:[%s1751_s7 + $0x40] sm:$0xff]   ;;  %p1552_p4 = pnand %p1551_p12, %p1999_p13 }
  0x3f   : > { %1350 = vmatprep.subr.bf16.mxu1 %v1481_v9  ;;  %v1497_v25 = vld [vmem:[%s1751_s7 + $0xc8] sm:$0xff]   ;;  %v1501_v29 = vld [vmem:[%s1751_s7 + $0xc0] sm:$0xff]   ;;  %v273_v40 = vld [vmem:[%s1981_s0 + $0x10] sm:$0x11] }
  0x40   : > { %v1498_v26 = vld [vmem:[%s1751_s7 + $0x8] sm:$0xff]   ;;  %v1502_v30 = vld [vmem:[%s1751_s7] sm:$0xff]   ;;  %v282_v41 = vld [vmem:[%s1982_s1 + $0x10] sm:$0x11]  ;;  %v278_v47 = vunpack.c.l.bf16 %v273_v40  ;;  %v279_v48 = vunpack.c.h.bf16 %v273_v40  ;;  %p1553_p5 = pneg %p1552_p4 }
  0x41   : > { %1323 = vmatpush3.bf16.msra.mxu0 %v1482_v10  ;;  %v1499_v27 = vld [vmem:[%s1751_s7 + $0x88] sm:$0xff]   ;;  %v1503_v31 = vld [vmem:[%s1751_s7 + $0x80] sm:$0xff]   ;;  %v1504_v46 = vld [vmem:[%s1751_s7 + $0x178] sm:$0xff]   ;;  %v287_v49 = vunpack.c.l.bf16 %v282_v41  ;;  %v288_v50 = vunpack.c.h.bf16 %v282_v41 }
  0x42   : > { %1351 = vmatpush3.bf16.msra.mxu1 %v1483_v11  ;;  %1324 = vmatprep.subr.bf16.mxu0 %v1484_v12  ;;  %v271_v32 = vld [vmem:[%s1981_s0] sm:$0xff]  ;;  %v272_v33 = vld [vmem:[%s1981_s0 + $0x8] sm:$0xff]  ;;  %v1813_v61 = vld [vmem:[%s1751_s7 + $0x138] sm:$0xff]  }
  0x43   : > { %1352 = vmatprep.subr.bf16.mxu1 %v1485_v13  ;;  %v280_v34 = vld [vmem:[%s1982_s1] sm:$0xff]  ;;  %v274_v35 = vunpack.c.l.bf16 %v271_v32  ;;  %v275_v36 = vunpack.c.h.bf16 %v271_v32  ;;  %v276_v37 = vunpack.c.l.bf16 %v272_v33  ;;  %v277_v38 = vunpack.c.h.bf16 %v272_v33  ;;  %v281_v39 = vld [vmem:[%s1982_s1 + $0x8] sm:$0xff]  ;;  %v1818_v63 = vld [vmem:[%s1751_s7 + $0x170] sm:$0xff]  }
  0x44   : > { %v283_v42 = vunpack.c.l.bf16 %v280_v34  ;;  %v284_v43 = vunpack.c.h.bf16 %v280_v34  ;;  %v285_v44 = vunpack.c.l.bf16 %v281_v39  ;;  %v286_v45 = vunpack.c.h.bf16 %v281_v39  ;;  %v1827_v6 = vld [vmem:[%s1751_s7 + $0x130] sm:$0xff]   ;;  %vm1832_vm4 = vmor %vm316_vm0, %vm317_vm1  ;;  %v1838_v12 = vld [vmem:[%s1751_s7 + $0x168] sm:$0xff]  }
  0x45   : > { %1325 = vmatpush3.bf16.msra.mxu0 %v1486_v14  ;;  %v293_v55 = vadd.f32 %v287_v49, %v278_v47  ;;  %v294_v56 = vadd.f32 %v288_v50, %v279_v48  ;;  %vm1846_vm5 = vmor %vm347_vm2, %vm348_vm3  ;;  %v1239_v32 = vld [vmem:[%s1982_s1 + $0x28] sm:$0x11]  ;;  %v1874_v34 = vld [vmem:[%s1751_s7 + $0x160] sm:$0xff]  }
  0x46   : > { %1353 = vmatpush3.bf16.msra.mxu1 %v1487_v15  ;;  %1326 = vmatprep.subr.bf16.mxu0 %v1488_v16  ;;  %v289_v51 = vadd.f32 %v283_v42, %v274_v35  ;;  %v290_v52 = vadd.f32 %v284_v43, %v275_v36  ;;  %v291_v53 = vadd.f32 %v285_v44, %v276_v37  ;;  %v1234_v16 = vld [vmem:[%s1981_s0 + $0x18] sm:$0xff]  ;;  %v1882_v48 = vld [vmem:[%s1751_s7 + $0x120] sm:$0xff]   ;;  %v379_v49 = vunpack.c.l.bf16 %v1239_v32 }
  0x47   : > { %1354 = vmatprep.subr.bf16.mxu1 %v1489_v17  ;;  %v292_v54 = vadd.f32 %v286_v45, %v277_v38  ;;  %v1815_v62 = vpack.c.bf16 %v294_v56, %v293_v55  ;;  %v380_v50 = vunpack.c.h.bf16 %v1239_v32 }
  0x48   : > { %v1808_v57 = vpack.c.bf16 %v290_v52, %v289_v51  ;;  %v1314_v60 = vpack.c.bf16 %v291_v53, %v289_v51  ;;  %v1886_v51 = vld [vmem:[%s1751_s7 + $0x158] sm:$0xff]  }
  0x49   : > { %1327 = vmatpush3.bf16.msra.mxu0 %v1490_v18  ;;  %v1810_v58 = vpack.c.bf16 %v292_v54, %v291_v53  ;;  %v1315_v59 = vpack.c.bf16 %v292_v54, %v290_v52  ;;  %v339_v5 = vshll.u32 %v1815_v62, 16 }
  0x4a   : > { %1355 = vmatpush3.bf16.msra.mxu1 %v1491_v19  ;;  %1328 = vmatprep.subr.bf16.mxu0 %v1492_v20  ;;  %v320_v1 = vshrl.u32 %v1808_v57, 16  ;;  %v323_v2 = vshll.u32 %v1808_v57, 16  ;;  %v1233_v13 = vrot.slane %v1808_v57, 9  ;;  %v1235_v20 = vld [vmem:[%s1981_s0 + $0x20] sm:$0xff] }
  0x4b   : > { %1356 = vmatprep.subr.bf16.mxu1 %v1493_v21  ;;  %v352_v0 = vrot.slane %v1810_v58, 5  ;;  %935 = vmatprep.mubr.bf16.mxu0 %v1315_v59  ;;  %v329_v3 = vshll.u32 %v1810_v58, 16  ;;  %v333_v4 = vshrl.u32 %v1810_v58, 16  ;;  %v341_v15 = vrot.slane %v339_v5, 5 }
  0x4c   : > { %v322_v7 = vrot.slane %v320_v1, 4  ;;  %v325_v8 = vrot.slane %v323_v2, 5  ;;  %v365_v21 = vunpack.c.l.bf16 %v1234_v16 }
  0x4d   : > { %1329 = vmatpush3.bf16.msra.mxu0 %v1494_v22  ;;  %v331_v10 = vrot.slane %v329_v3, 5  ;;  %v335_v11 = vrot.slane %v333_v4, 4  ;;  %v354_v18 = vrot.slane %v352_v0, 4  ;;  %v366_v22 = vunpack.c.h.bf16 %v1234_v16 }
  0x4e   : > { %1357 = vmatpush3.bf16.msra.mxu1 %v1495_v23  ;;  %1330 = vmatprep.subr.bf16.mxu0 %v1496_v24  ;;  %v326_v14 = vor.u32 %v325_v8, %v322_v7  ;;  %v1237_v23 = vld [vmem:[%s1982_s1 + $0x18] sm:$0xff]  ;;  %v1238_v24 = vld [vmem:[%s1982_s1 + $0x20] sm:$0xff]  ;;  %v1892_v55 = vsel %vm1846_vm5, %v1233_v13, %v352_v0 }
  0x4f   : > { %1358 = vmatprep.subr.bf16.mxu1 %v1497_v25  ;;  %v336_v19 = vor.u32 %v335_v11, %v331_v10  ;;  %v355_v25 = vrot.slane %v1815_v62, 5  ;;  %v376_v35 = vunpack.c.h.bf16 %v1237_v23  ;;  %v377_v36 = vunpack.c.l.bf16 %v1238_v24  ;;  %v1513_v0 = vld [vmem:[%s1751_s7 + $0x118] sm:$0xff]   ;;  %v1514_v11 = vld [vmem:[%s1751_s7 + $0x150] sm:$0xff]  }
  0x50   : > { %v378_v37 = vunpack.c.h.bf16 %v1238_v24 }
  0x51   : > { %1331 = vmatpush3.bf16.msra.mxu0 %v1498_v26  ;;  %v327_v26 = vrot.slane %v326_v14, 4  ;;  %v337_v33 = vrot.slane %v336_v19, 4  ;;  %v382_v43 = vadd.f32 %v376_v35, %v366_v22  ;;  %v1515_v19 = vld [vmem:[%s1751_s7 + $0x110] sm:$0xff]  }
  0x52   : > { %1359 = vmatpush3.bf16.msra.mxu1 %v1499_v27  ;;  %1332 = vmatprep.subr.bf16.mxu0 %v1500_v28  ;;  %v1864_v27 = vld [vmem:[%s1751_s7 + $0x128] sm:$0xff]   ;;  %v367_v28 = vunpack.c.l.bf16 %v1235_v20 }
  0x53   : > { %1360 = vmatprep.subr.bf16.mxu1 %v1501_v29  ;;  %v368_v29 = vunpack.c.h.bf16 %v1235_v20  ;;  %v332_v38 = vsel %vm1832_vm4, %v327_v26, %v331_v10  ;;  %v342_v42 = vsel %vm1832_vm4, %v337_v33, %v341_v15 }
  0x54   : > { %v383_v44 = vadd.f32 %v377_v36, %v367_v28  ;;  %v1247_v47 = vcombine.high %v332_v38, %v342_v42 }
  0x55   : > { %1333 = vmatpush3.bf16.msra.mxu0 %v1502_v30  ;;  %v375_v30 = vunpack.c.l.bf16 %v1237_v23  ;;  %v384_v45 = vadd.f32 %v378_v37, %v368_v29  ;;  %v1516_v23 = vld [vmem:[%s1751_s7 + $0x148] sm:$0xff]  }
  0x56   : > { %1361 = vmatpush3.bf16.msra.mxu1 %v1503_v31  ;;  %1374 = vmatprep.subr.bf16.mxu0 %v1504_v46  ;;  %v1236_v31 = vld [vmem:[%s1981_s0 + $0x28] sm:$0x11] }
  0x57   : > { %1402 = vmatprep.subr.bf16.mxu1 %v1504_v46  ;;  %v381_v39 = vadd.f32 %v375_v30, %v365_v21  ;;  %v369_v40 = vunpack.c.l.bf16 %v1236_v31  ;;  %v370_v41 = vunpack.c.h.bf16 %v1236_v31  ;;  %v1246_v46 = vcombine.low %v332_v38, %v342_v42  ;;  %984 = vmatprep.mubr.bf16.mxu1 %v1247_v47  ;;  %v1517_v29 = vld [vmem:[%s1751_s7 + $0x108] sm:$0xff]   ;;  %v1518_v30 = vld [vmem:[%s1751_s7 + $0x140] sm:$0xff]  }
  0x58   : > { %936 = vmatmul.mubr.bf16.vlgmr.msra.gmra.mxu0 %v1314_v60  ;;  %v1312_v53 = vpack.c.bf16 %v384_v45, %v383_v44  ;;  %v1317_v54 = vpack.c.bf16 %v384_v45, %v382_v43  ;;  %v356_v60 = vsel %vm1846_vm5, %v354_v18, %v355_v25  ;;  %v1519_v31 = vld [vmem:[%s1751_s7 + $0x100] sm:$0xff]   ;;  %s265_s7 = scalar_select %p264_p11, %s1675_s22, 1 }
  0x59   : > { %1375 = vmatpush3.bf16.msra.mxu0 %v1813_v61  ;;  %v1311_v52 = vpack.c.bf16 %v382_v43, %v381_v39  ;;  %v385_v56 = vadd.f32 %v379_v49, %v369_v40  ;;  %v386_v57 = vadd.f32 %v380_v50, %v370_v41  ;;  %v1316_v59 = vpack.c.bf16 %v383_v44, %v381_v39  ;;  %s1121_s22 = scalar_lea.sflag [#allocation5], %s1747_s23 }
  0x5a   : > { %1376 = vmatprep.subr.bf16.mxu0 %v1818_v63  ;;  %985 = vmatmul.mubr.bf16.vlgmr.msra.gmra.mxu1 %v1246_v46  ;;  %v418_v2 = vshll.u32 %v1312_v53, 16  ;;  %v422_v3 = vshrl.u32 %v1312_v53, 16  ;;  %v1249_v4 = vcombine.high %v1892_v55, %v356_v60  ;;  %v1248_v17 = vcombine.low %v1892_v55, %v356_v60  ;;  %s266_s25 = scalar_lea.vmem %s1984_s3, %s265_s7  ;;  %s269_s11 = scalar_lea.vmem %s1985_s4, %s265_s7 }
  0x5b   : > { %943 = vmatprep.mubr.bf16.mxu0 %v1317_v54  ;;  %v409_v62 = vshrl.u32 %v1311_v52, 16  ;;  %v412_v1 = vshll.u32 %v1311_v52, 16  ;;  %1410 = vmatpush3.bf16.msra.mxu1 %v1813_v61  ;;  %v1313_v58 = vpack.c.bf16 %v386_v57, %v385_v56  ;;  %v438_v61 = vrot.slane %v1312_v53, 5  ;;  %s1620_s7 = smov [#allocation6]  }
  0x5c   : > { %1403 = vmatprep.subr.bf16.mxu1 %v1818_v63  ;;  %v420_v8 = vrot.slane %v418_v2, 5  ;;  %v424_v10 = vrot.slane %v422_v3, 4  ;;  %v1243_v16 = vrot.slane %v1311_v52, 9  ;;  %s1554_s16 = sshll.u32 %s1620_s7, 4  ;;  %s1555_s16 = int_to_ptr.vmem [resolvable:$false] %s1554_s16 }
  0x5d   : > { %1377 = vmatpush3.bf16.msra.mxu0 %v1827_v6  ;;  %v411_v5 = vrot.slane %v409_v62, 4  ;;  %v414_v7 = vrot.slane %v412_v1, 5  ;;  %v428_v13 = vshll.u32 %v1313_v58, 16  ;;  %v441_v18 = vrot.slane %v1313_v58, 5  ;;  %s1556_s17 = scalar_lea.vmem %s1555_s16, 1024  ;;  %p1557_p7 = scmp.lt.s32.totalorder %s1933_s15, %s1555_s16 }
  0x5e   : > { %1378 = vmatprep.subr.bf16.mxu0 %v1838_v12  ;;  %v425_v15 = vor.u32 %v424_v10, %v420_v8  ;;  %v440_v20 = vrot.slane %v438_v61, 4  ;;  %p1558_p8 = scmp.lt.s32.totalorder %s1556_s17, %s1550_s13 }
  0x5f   : > { %v415_v14 = vor.u32 %v414_v7, %v411_v5  ;;  %1411 = vmatpush3.bf16.msra.mxu1 %v1827_v6  ;;  %v430_v63 = vrot.slane %v428_v13, 5  ;;  %v439_v6 = vsel %vm1846_vm5, %v1243_v16, %v438_v61 }
  0x60   : > { %944 = vmatmul.mubr.bf16.gmra.mxu0 %v1316_v59  ;;  %1404 = vmatprep.subr.bf16.mxu1 %v1838_v12  ;;  %v426_v22 = vrot.slane %v425_v15, 4  ;;  %v442_v26 = vsel %vm1846_vm5, %v440_v20, %v441_v18  ;;  %p1559_p10 = por %p1558_p8, %p1557_p7 }
  0x61   : > { %1379 = vmatpush3.bf16.msra.mxu0 %v1864_v27  ;;  %1033 = vmatprep.mubr.bf16.mxu0 %v1249_v4  ;;  %v416_v21 = vrot.slane %v415_v14, 4  ;;  %v1255_v9 = vcombine.high %v439_v6, %v442_v26 }
  0x62   : > { %1380 = vmatprep.subr.bf16.mxu0 %v1874_v34  ;;  %v431_v25 = vsel %vm1832_vm4, %v426_v22, %v430_v63  ;;  %p1560_p1 = pnand %p1559_p10, %p1553_p5 }
  0x63   : > { %v421_v24 = vsel %vm1832_vm4, %v416_v21, %v420_v8  ;;  %1412 = vmatpush3.bf16.msra.mxu1 %v1864_v27  ;;  %v1254_v27 = vcombine.low %v439_v6, %v442_v26 }
  0x64   : > { %v1253_v12 = vcombine.high %v421_v24, %v431_v25  ;;  %v1252_v28 = vcombine.low %v421_v24, %v431_v25  ;;  %1405 = vmatprep.subr.bf16.mxu1 %v1874_v34 }
  0x65   : > { %1381 = vmatpush3.bf16.msra.mxu0 %v1882_v48 }
  0x66   : > { %1382 = vmatprep.subr.bf16.mxu0 %v1886_v51  ;;  %992 = vmatprep.mubr.bf16.mxu1 %v1253_v12 }
  0x67   : > { %993 = vmatmul.mubr.bf16.gmra.mxu1 %v1252_v28 }
  0x68   : > { %1413 = vmatpush3.bf16.msra.mxu1 %v1882_v48  ;;  %1041 = vmatprep.mubr.bf16.mxu1 %v1255_v9 }
  0x69   : > { %1383 = vmatpush3.bf16.msra.mxu0 %v1513_v0  ;;  %1406 = vmatprep.subr.bf16.mxu1 %v1886_v51 }
  0x6a   : > { %1384 = vmatprep.subr.bf16.mxu0 %v1514_v11 }
  0x6c   : > { %1414 = vmatpush3.bf16.msra.mxu1 %v1513_v0 }
  0x6d   : > { %1385 = vmatpush3.bf16.msra.mxu0 %v1515_v19  ;;  %1407 = vmatprep.subr.bf16.mxu1 %v1514_v11 }
  0x6e   : > { %1386 = vmatprep.subr.bf16.mxu0 %v1516_v23 }
  0x70   : > { %1415 = vmatpush3.bf16.msra.mxu1 %v1515_v19 }
  0x71   : > { %1387 = vmatpush3.bf16.msra.mxu0 %v1517_v29  ;;  %1408 = vmatprep.subr.bf16.mxu1 %v1516_v23 }
  0x72   : > { %1388 = vmatprep.subr.bf16.mxu0 %v1518_v30 }
  0x74   : > { %1416 = vmatpush3.bf16.msra.mxu1 %v1517_v29 }
  0x75   : > { %1389 = vmatpush3.bf16.msra.mxu0 %v1519_v31  ;;  %1409 = vmatprep.subr.bf16.mxu1 %v1518_v30 }
  0x78   : > { %1034 = vmatmul.mubr.bf16.vlgmr.msra.gmra.mxu0 %v1248_v17  ;;  %1417 = vmatpush3.bf16.msra.mxu1 %v1519_v31 }
  0x7b   : > { %1042 = vmatmul.mubr.bf16.vlgmr.msra.gmra.mxu1 %v1254_v27 }
 0x118   : > { %v1334_v32 = vpop.f32.mrf.mxu0 }
 0x11a   : > { %v1335_v33 = vpop.f32.mrf.mxu0  ;;  %v1362_v35 = vpop.f32.mrf.mxu1 }
 0x11b   : > { %v1336_v51 = vadd.f32 %v1335_v33, %v1334_v32 }
 0x11c   : > { %v1337_v34 = vpop.f32.mrf.mxu0  ;;  %v1363_v38 = vpop.f32.mrf.mxu1 }
 0x11d   : > { %v1364_v52 = vadd.f32 %v1363_v38, %v1362_v35 }
 0x11e   : > { %v1338_v36 = vpop.f32.mrf.mxu0  ;;  %v1365_v40 = vpop.f32.mrf.mxu1 }
 0x11f   : > { %v1339_v48 = vadd.f32 %v1338_v36, %v1337_v34  ;;  %v987_v59 = vadd.f32 %v1364_v52, %v1336_v51 }
 0x120   : > { %v1340_v37 = vpop.f32.mrf.mxu0  ;;  %v1366_v42 = vpop.f32.mrf.mxu1 }
 0x121   : > { %v1367_v49 = vadd.f32 %v1366_v42, %v1365_v40  ;;  %v1085_v40 = vlaneseq  ;;  %v1079_v42 = vld [vmem:[%s266_s25] sm:$0x1] }
 0x122   : > { %v1341_v39 = vpop.f32.mrf.mxu0 }
 0x123   : > { %v990_v55 = vadd.f32 %v1367_v49, %v1339_v48  ;;  %v1342_v62 = vadd.f32 %v1341_v39, %v1340_v37 }
 0x124   : > { %v1343_v41 = vpop.f32.mrf.mxu0 }
 0x126   : > { %v1344_v44 = vpop.f32.mrf.mxu0 }
 0x127   : > { %v1368_v43 = vpop.f32.mrf.mxu1  ;;  %v1345_v5 = vadd.f32 %v1344_v44, %v1343_v41  ;;  %v1086_v41 = vshrl.u32 %v1085_v40, 7 }
 0x129   : > { %v1369_v46 = vpop.f32.mrf.mxu1 }
 0x12a   : > { %v1370_v1 = vadd.f32 %v1369_v46, %v1368_v43  ;;  %v1087_v43 = vsub.s32 0, %v1086_v41  ;;  %v1081_v46 = vld [vmem:[%s269_s11] sm:$0x1] }
 0x12b   : > { %v1371_v53 = vpop.f32.mrf.mxu1 }
 0x12c   : > { %v995_v4 = vadd.f32 %v1370_v1, %v1342_v62 }
 0x12d   : > { %v1372_v2 = vpop.f32.mrf.mxu1 }
 0x12e   : > { %v1373_v8 = vadd.f32 %v1372_v2, %v1371_v53 }
 0x130   : > { %v998_v18 = vadd.f32 %v1373_v8, %v1345_v5 }
 0x138   : > { %v1390_v45 = vpop.f32.mrf.mxu0 }
 0x13a   : > { %v1391_v47 = vpop.f32.mrf.mxu0 }
 0x13b   : > { %v1392_v56 = vadd.f32 %v1391_v47, %v1390_v45  ;;  %v1396_v58 = vpop.f32.mrf.mxu1 }
 0x13c   : > { %v1393_v50 = vpop.f32.mrf.mxu0 }
 0x13d   : > { %v1036_v3 = vadd.f32 %v1392_v56, %v987_v59  ;;  %v1397_v7 = vpop.f32.mrf.mxu1 }
 0x13e   : > { %v1394_v54 = vpop.f32.mrf.mxu0  ;;  %v1398_v11 = vadd.f32 %v1397_v7, %v1396_v58 }
 0x13f   : > { %v1395_v57 = vadd.f32 %v1394_v54, %v1393_v50  ;;  %v1059_v10 = vmul.f32 %v1036_v3, %v1036_v3  ;;  %v1399_v61 = vpop.f32.mrf.mxu1 }
 0x140   : > { %v1044_v14 = vadd.f32 %v1398_v11, %v995_v4 }
 0x141   : > { %v1039_v60 = vadd.f32 %v1395_v57, %v990_v55  ;;  %v1400_v16 = vpop.f32.mrf.mxu1 }
 0x142   : > { %v1061_v63 = vmul.f32 %v1044_v14, %v1044_v14  ;;  %v1401_v19 = vadd.f32 %v1400_v16, %v1399_v61 }
 0x143   : > { %v1060_v0 = vmul.f32 %v1039_v60, %v1039_v60  ;;  %v1050_v13 = vadd.f32 %v1039_v60, %v1036_v3 }
 0x144   : > { %v1047_v21 = vadd.f32 %v1401_v19, %v998_v18 }
 0x145   : > { %v1063_v15 = vadd.f32 %v1060_v0, %v1059_v10  ;;  %v1051_v20 = vadd.f32 %v1050_v13, %v1044_v14 }
 0x146   : > { %v1062_v24 = vmul.f32 %v1047_v21, %v1047_v21 }
 0x147   : > { %v1064_v22 = vadd.f32 %v1063_v15, %v1061_v63  ;;  %v1052_v23 = vadd.f32 %v1051_v20, %v1047_v21 }
 0x149   : > { %v1053_v25 = vrot.slane %v1052_v23, 4  ;;  %v1065_v6 = vadd.f32 %v1064_v22, %v1062_v24 }
 0x14b   : > { %v1054_v26 = vadd.f32 %v1053_v25, %v1052_v23  ;;  %v1066_v12 = vrot.slane %v1065_v6, 4 }
 0x14d   : > { %v1055_v28 = vrot.slane %v1054_v26, 2  ;;  %v1067_v29 = vadd.f32 %v1066_v12, %v1065_v6 }
 0x14f   : > { %v1056_v30 = vadd.f32 %v1055_v28, %v1054_v26  ;;  %v1068_v9 = vrot.slane %v1067_v29, 2 }
 0x151   : > { %v1057_v31 = vrot.slane %v1056_v30, 1  ;;  %v1069_v17 = vadd.f32 %v1068_v9, %v1067_v29 }
 0x153   : > { %v1058_v27 = vadd.f32 %v1057_v31, %v1056_v30  ;;  %v1070_v32 = vrot.slane %v1069_v17, 1 }
 0x155   : > { %v1071_v33 = vadd.f32 %v1070_v32, %v1069_v17  ;;  %v1072_v34 = vmul.f32 0.03125, %v1058_v27 }
 0x157   : > { %v1073_v35 = vmul.f32 0.03125, %v1071_v33  ;;  %v1074_v36 = vmul.f32 %v1072_v34, %v1072_v34 }
 0x159   : > { %v1075_v37 = vsub.f32 %v1073_v35, %v1074_v36 }
 0x15b   : > { %v1076_v38 = vmax.f32 %v1075_v37, 0.0 }
 0x15d   : > { %v1077_v39 = vadd.f32 1e-05, %v1076_v38 }
 0x15f   : > { %1520 = vrsqrt.f32 %v1077_v39 }
 0x16c   : > { %v1521_v44 = vpop.eup %1520 }
 0x16d   : > { %v1080_v45 = vmul.f32 %v1521_v44, %v1079_v42 }
 0x16f   : > { %v1082_v47 = vmul.f32 %v1080_v45, %v1072_v34  ;;  %v1088_v48 = vrot.slane %v1080_v45, %v1087_v43 }
 0x171   : > { %v1083_v49 = vsub.f32 %v1081_v46, %v1082_v47  ;;  %v1090_v50 = vmul.f32 %v1088_v48, %v1036_v3  ;;  %v1091_v51 = vmul.f32 %v1088_v48, %v1039_v60  ;;  %v1092_v52 = vmul.f32 %v1088_v48, %v1044_v14 }
 0x172   : > { %v1093_v53 = vmul.f32 %v1088_v48, %v1047_v21 }
 0x173   : > { %v1098_v54 = vrot.slane %v1083_v49, %v1087_v43 }
 0x175   : > { %v1100_v55 = vadd.f32 %v1098_v54, %v1090_v50  ;;  %v1101_v56 = vadd.f32 %v1098_v54, %v1091_v51  ;;  %v1102_v57 = vadd.f32 %v1098_v54, %v1092_v52  ;;  %v1103_v59 = vadd.f32 %v1098_v54, %v1093_v53 }
 0x177   : > { %vm1104_vm6 = vcmp.ge.f32.partialorder %v1100_v55, 0.0  ;;  %vm1105_vm7 = vcmp.ge.f32.partialorder %v1101_v56, 0.0  ;;  %vm1106_vm8 = vcmp.ge.f32.partialorder %v1102_v57, 0.0  ;;  %vm1107_vm9 = vcmp.ge.f32.partialorder %v1103_v59, 0.0 }
 0x178   : > { %v1108_v62 = vmul.f32 0.2, %v1100_v55  ;;  %v1109_v1 = vmul.f32 0.2, %v1101_v56  ;;  %v1110_v2 = vmul.f32 0.2, %v1102_v57 }
 0x179   : > { %v1111_v60 = vmul.f32 0.2, %v1103_v59 }
 0x17a   : > { %v1112_v3 = vsel %vm1104_vm6, %v1100_v55, %v1108_v62  ;;  %v1113_v58 = vsel %vm1105_vm7, %v1101_v56, %v1109_v1  ;;  %v1114_v0 = vsel %vm1106_vm8, %v1102_v57, %v1110_v2 }
 0x17b   : > { %v1115_v4 = vsel %vm1107_vm9, %v1103_v59, %v1111_v60  ;;  %1116 = vst [vmem:[%s263_s14] sm:$0xff] %v1112_v3  ;;  %1117 = vst [vmem:[%s263_s14 + $0x8] sm:$0xff] %v1113_v58 }
 0x17c   : > { %1118 = vst [vmem:[%s263_s14 + $0x10] sm:$0xff] %v1114_v0  ;;  %1119 = vst [vmem:[%s263_s14 + $0x18] sm:$0xff] %v1115_v4 }
 0x17d   : > { %1563 = shalt.err (!%p1560_p1)
}
 0x17e   : > { %s1564_s25 = scalar_lea.hbm %s1938_s10, 512  ;;  %s1568_s11 = scalar_lea.hbm %s1986_s5, 1024 }
 0x17f   : > { %p1565_p3 = scmp.ne.s32.totalorder %s1938_s10, %s1564_s25  ;;  %p1569_p2 = scmp.lt.s32.totalorder %s1938_s10, %s1986_s5 }
 0x180   : > { %p1570_p6 = scmp.lt.s32.totalorder %s1568_s11, %s1564_s25 }
 0x181   : > { %p1566_p9 = pnand %p1565_p3, %p1999_p13 }
 0x182   : > { %p1571_p11 = por %p1570_p6, %p1569_p2 }
 0x183   : > { %p1567_p0 = pneg %p1566_p9 }
 0x185   : > { %p1572_p12 = pnand %p1571_p11, %p1567_p0 }
 0x187   : > { %1575 = shalt.err (!%p1572_p12)
}
 0x188   : > { %s1621_s6 = smov 128   ;;  %s1622_s8 = smov 256  }
 0x189   : > { %s1623_s9 = smov 8  }
 0x18a   : > { %1422 = dma.vmem_to_hbm [thread:$0]  (%p1999_p13), %s1933_s15, 512, %s1938_s10, %s1121_s22, %s1621_s6, %s1622_s8, %s1623_s9  }
 0x18b PF: > { %s1148_s13 = sand.u32 1, %s1602_s18   ;;  %p2000_p4 = scmp.ne.s32.totalorder %s1991_s30, 0 }
 0x18c   : > { %p2001_p5 = scmp.ge.s32.totalorder %s1614_s21, 2  ;;  %s1149_s7 = scalar_lea.sflag [#allocation5], %s1148_s13 }
 0x18e   : > { %p1429_p7 = pnand %p2001_p5, %p2000_p4 }
 0x190   : > { %p1430_p8 = pneg %p1429_p7 }
 0x192   : > { %1597 = dma.done.wait (%p1430_p8), %s1149_s7, 512  }
 0x193   : > { %1599 = vsyncadd (%p1430_p8), %s1149_s7, 4294966784  ;;  %p18_p10 = scmp.ge.s32.totalorder %s1679_s24, 4   ;;  %s2002_s18 = smov %s1606_s19 }
 0x194   : > { %s2003_s19 = smov %s1610_s20  ;;  %s2004_s20 = smov %s1691_s27 }
 0x195   : > { %s2005_s21 = smov %s1679_s24  ;;  %20 = sbr.rel (!%p18_p10) target bundleno = 5 (0x5), region = 93 }
 0x19a   :  { %1154 = vsyncpa [#allocation4], 1 }
 0x19b   :  { %1156 = vsyncpa [#allocation4 + $0x1], 1 }
 0x19c   :  { %1157 = vsyncpa [#allocation5], 1 }
 0x19d   :  { %1159 = vsyncpa [#allocation5 + $0x1], 1 }

</bundles_post_ra>
